<compile_context>
chip_gen: v7x
topology: tpu7x:2x2x1
jax: 0.10.0
libtpu: 0.0.40
codegen_flags: <defaults>
</compile_context>

<pallas_src>
import functools

import jax
import jax.numpy as jnp
from jax.experimental import pallas as pl
from jax.experimental.pallas import tpu as pltpu


def _codebook_kernel(z_ref, e_ref, e2_ref, zq_ref, idx_ref, loss_ref):
    D, tn = z_ref.shape[1], z_ref.shape[2]
    K = e_ref.shape[0]

    z_t = z_ref[0]                       # (D, tn) f32, tokens lane-dense
    e = e_ref[...]                       # (K, D)  f32

    # Transposed distances (up to the per-token ||z||^2 constant, which does
    # not change the argmin):  d_t[k, n] = ||e_k||^2 - 2 <e_k, z_n>.
    # bf16 operands -> guaranteed single-pass MXU; accumulate in f32.
    ze_t = jax.lax.dot_general(
        e.astype(jnp.bfloat16), z_t.astype(jnp.bfloat16),
        dimension_numbers=(((1,), (0,)), ((), ())),
        preferred_element_type=jnp.float32)                    # (K, tn)
    d_t = e2_ref[...] - 2.0 * ze_t                             # (K,1)->(K,tn)

    # First-occurrence argmin over the codebook (sublane) axis -> lane-dense
    # (1, tn) indices, matching torch.argmin tie-breaking.  int32 iota: no
    # float casts on the compare / select passes.
    min_d = jnp.min(d_t, axis=0, keepdims=True)                # (1, tn)
    iota_k = jax.lax.broadcasted_iota(jnp.int32, (K, tn), 0)   # (K, tn)
    idx_i = jnp.min(jnp.where(d_t == min_d, iota_k, K),
                    axis=0, keepdims=True)                     # (1, tn) i32

    # Gather the selected codebook rows with a one-hot matmul, producing z_q
    # already transposed (D, tn).  Keep operands f32 / HIGHEST so z_q stays
    # bit-faithful to the embedding table.
    one_hot = (iota_k == idx_i).astype(jnp.float32)            # (K, tn)
    z_q_t = jax.lax.dot_general(
        e, one_hot, dimension_numbers=(((0,), (0,)), ((), ())),
        preferred_element_type=jnp.float32,
        precision=jax.lax.Precision.HIGHEST)                   # (D, tn)

    zq_ref[0] = z_q_t.astype(zq_ref.dtype)
    idx_ref[...] = idx_i.reshape(1, 1, 1, tn)

    # Per-token loss partials: reduce over the small D (=32 sublane) axis, not
    # the token axis -> cheap XLU reduction, lane-dense (1, tn) output.  Any
    # garbage lanes of a ragged last tile are sliced off in the glue.
    diff = z_q_t - z_t
    loss_ref[...] = jnp.sum(diff * diff, axis=0,
                            keepdims=True).reshape(1, 1, 1, tn)


@functools.partial(jax.jit, static_argnames=("beta", "tn"))
def codebook_forward(z_nchw, embedding, beta=0.25, tn=512):
    """Forward pass of the PyTorch `Codebook` module.

    z_nchw:    (B, latent_dim, H, W) float
    embedding: (num_codebook_vectors, latent_dim) float
    returns (z_q (B, latent_dim, H, W), min_encoding_indices (B*H*W,), loss)
    """
    B, C, H, W = z_nchw.shape
    K, D = embedding.shape
    assert C == D
    assert tn % 128 == 0
    HW = H * W
    N = B * HW

    # NCHW-native view: (B, D, H*W) is a free reshape -- no HBM transpose.
    z3 = z_nchw.astype(jnp.float32).reshape(B, D, HW)

    # Token tile along the lane axis.  Either a multiple of 128 (ragged last
    # block handled by Pallas' masked partial blocks) or the full H*W extent.
    if HW <= tn:
        tn_eff = HW
        if B == 1 and HW % 256 == 0:
            tn_eff = HW // 2        # >= 2 grid tiles so both v7x TCs get work
    else:
        tn_eff = tn
    num_tiles = pl.cdiv(HW, tn_eff)

    e = embedding.astype(jnp.float32)
    e_sq = jnp.sum(e * e, axis=1, keepdims=True)               # (K, 1)

    zq3, idx_tiles, loss_parts = pl.pallas_call(
        _codebook_kernel,
        grid=(B, num_tiles),
        in_specs=[
            pl.BlockSpec((1, D, tn_eff), lambda b, j: (b, 0, j)),   # z tile
            pl.BlockSpec((K, D), lambda b, j: (0, 0)),              # codebook
            pl.BlockSpec((K, 1), lambda b, j: (0, 0)),              # ||e||^2
        ],
        out_specs=[
            pl.BlockSpec((1, D, tn_eff), lambda b, j: (b, 0, j)),       # z_q
            pl.BlockSpec((1, 1, 1, tn_eff), lambda b, j: (b, j, 0, 0)),  # idx
            pl.BlockSpec((1, 1, 1, tn_eff), lambda b, j: (b, j, 0, 0)),  # loss
        ],
        out_shape=(
            jax.ShapeDtypeStruct((B, D, HW), jnp.float32),
            jax.ShapeDtypeStruct((B, num_tiles, 1, tn_eff), jnp.int32),
            jax.ShapeDtypeStruct((B, num_tiles, 1, tn_eff), jnp.float32),
        ),
        compiler_params=pltpu.CompilerParams(
            dimension_semantics=("parallel", "parallel"),
            vmem_limit_bytes=48 * 1024 * 1024),
    )(z3, e, e_sq)

    # ---- plain-JAX glue: reshape / finalize (no transposes) ----
    z_q_nchw = zq3.reshape(B, D, H, W)
    idx = idx_tiles.reshape(B, num_tiles * tn_eff)[:, :HW].reshape(-1)
    loss_valid = loss_parts.reshape(B, num_tiles * tn_eff)[:, :HW]

    # loss = mean((z_q.detach()-z)^2) + beta*mean((z_q - z.detach())^2)
    #      == (1 + beta) * mean((z_q - z)^2) in value.
    loss = (1.0 + beta) * jnp.sum(loss_valid) / jnp.float32(N * D)

    # Straight-through estimator z + (z_q - z).detach() has the same forward
    # value.  TODO(synk): gradients (detach semantics) need a custom_vjp.
    return z_q_nchw, idx, loss


if __name__ == "__main__":
    num_codebook_vectors = 64
    latent_dim = 32
    beta = 0.25
    B, H, W = 2, 8, 8

    key = jax.random.PRNGKey(0)
    k_emb, k_z = jax.random.split(key)
    embedding = jax.random.uniform(
        k_emb, (num_codebook_vectors, latent_dim), jnp.float32,
        minval=-1.0 / num_codebook_vectors, maxval=1.0 / num_codebook_vectors)
    z = jax.random.normal(k_z, (B, latent_dim, H, W), jnp.float32)

    z_q, idx, loss = codebook_forward(z, embedding, beta=beta)
    jax.block_until_ready((z_q, idx, loss))

    assert z_q.shape == (B, latent_dim, H, W)
    assert idx.shape == (B * H * W,)

    # ---- correctness checks (robust to bf16-rounded distance near-ties) ----
    z_tokens = jnp.transpose(z, (0, 2, 3, 1)).reshape(-1, latent_dim)
    d_f32 = (jnp.sum(z_tokens ** 2, axis=1, keepdims=True)
             + jnp.sum(embedding ** 2, axis=1)
             - 2.0 * z_tokens @ embedding.T)
    idx_ref = jnp.argmin(d_f32, axis=1)

    # 1) z_q must be exactly the gathered codebook rows (layout + gather path).
    zq_tokens = jnp.transpose(z_q, (0, 2, 3, 1)).reshape(-1, latent_dim)
    assert jnp.allclose(zq_tokens, embedding[idx], atol=1e-6, rtol=1e-6)
    assert jnp.all((idx >= 0) & (idx < num_codebook_vectors))

    # 2) chosen codes are (near-)optimal under f32 distances; bf16 MXU operands
    #    may flip argmin only at near-ties.
    d_sel = jnp.take_along_axis(d_f32, idx[:, None], axis=1)[:, 0]
    assert jnp.all(d_sel <= d_f32.min(axis=1) + 1e-2)
    assert jnp.mean((idx == idx_ref).astype(jnp.float32)) >= 0.9

    # 3) loss plumbing: matches (1+beta)*mean((z_q - z)^2) of the kernel outputs
    #    and the pure-f32 reference.
    loss_from_outputs = (1.0 + beta) * jnp.mean((zq_tokens - z_tokens) ** 2)
    assert jnp.allclose(loss, loss_from_outputs, atol=1e-4, rtol=1e-4)
    loss_ref = (1.0 + beta) * jnp.mean((embedding[idx_ref] - z_tokens) ** 2)
    assert jnp.allclose(loss, loss_ref, atol=1e-3, rtol=1e-3)

    print("KERNEL_OK")
</pallas_src>

<mosaic_0001>
module attributes {stable_mosaic.version = 11 : i64} {
  func.func @_codebook_kernel(%arg0: i32, %arg1: i32, %arg2: memref<1x32x64xf32, #tpu.memory_space<vmem>>, %arg3: memref<64x32xf32, #tpu.memory_space<vmem>>, %arg4: memref<64x1xf32, #tpu.memory_space<vmem>>, %arg5: memref<1x32x64xf32, #tpu.memory_space<vmem>>, %arg6: memref<1x1x1x64xi32, #tpu.memory_space<vmem>>, %arg7: memref<1x1x1x64xf32, #tpu.memory_space<vmem>>) attributes {dimension_semantics = [#tpu.dimension_semantics<parallel>, #tpu.dimension_semantics<parallel>], iteration_bounds = array<i64: 2, 1>, scalar_prefetch = 0 : i64, scratch_operands = 0 : i64, tpu.core_type = #tpu.core_type<tc>, window_params = [{transform_indices = @transform_0, window_bounds = array<i64: 1, 32, 64>}, {pipeline_mode = #tpu.pipeline_mode<synchronous>, transform_indices = @transform_1, window_bounds = array<i64: 64, 32>}, {pipeline_mode = #tpu.pipeline_mode<synchronous>, transform_indices = @transform_2, window_bounds = array<i64: 64, 1>}, {transform_indices = @transform_3, window_bounds = array<i64: 1, 32, 64>}, {transform_indices = @transform_4, window_bounds = array<i64: 1, 1, 1, 64>}, {transform_indices = @transform_5, window_bounds = array<i64: 1, 1, 1, 64>}]} {
    %c0 = arith.constant 0 : index
    %c0_0 = arith.constant 0 : index
    %c0_1 = arith.constant 0 : index
    %0 = vector.load %arg2[%c0, %c0_0, %c0_1] : memref<1x32x64xf32, #tpu.memory_space<vmem>>, vector<1x32x64xf32>
    %1 = vector.shape_cast %0 : vector<1x32x64xf32> to vector<32x64xf32>
    %c0_2 = arith.constant 0 : index
    %c0_3 = arith.constant 0 : index
    %2 = vector.load %arg3[%c0_2, %c0_3] : memref<64x32xf32, #tpu.memory_space<vmem>>, vector<64x32xf32>
    %3 = arith.truncf %2 : vector<64x32xf32> to vector<64x32xbf16>
    %4 = arith.truncf %1 : vector<32x64xf32> to vector<32x64xbf16>
    %cst = arith.constant dense<0.000000e+00> : vector<64x64xf32>
    %5 = tpu.matmul %3, %4, %cst {dimension_numbers = #tpu.dot_dimension_numbers<[1], [0], [0], [1], [0, 0, 1, 1], [], []>} : vector<64x32xbf16>, vector<32x64xbf16>, vector<64x64xf32> -> vector<64x64xf32>
    %c0_4 = arith.constant 0 : index
    %c0_5 = arith.constant 0 : index
    %6 = vector.load %arg4[%c0_4, %c0_5] : memref<64x1xf32, #tpu.memory_space<vmem>>, vector<64x1xf32>
    %cst_6 = arith.constant 2.000000e+00 : f32
    %7 = vector.broadcast %cst_6 : f32 to vector<64x64xf32>
    %8 = arith.mulf %7, %5 : vector<64x64xf32>
    %9 = vector.broadcast %6 : vector<64x1xf32> to vector<64x64xf32>
    %10 = arith.subf %9, %8 : vector<64x64xf32>
    %cst_7 = arith.constant dense<0x7F800000> : vector<64xf32>
    %11 = vector.multi_reduction <minimumf>, %10, %cst_7 [0] : vector<64x64xf32> to vector<64xf32>
    %12 = vector.shape_cast %11 : vector<64xf32> to vector<1x64xf32>
    %13 = tpu.iota {dimensions = array<i32: 0>} : vector<64x64xi32>
    %14 = vector.broadcast %12 : vector<1x64xf32> to vector<64x64xf32>
    %15 = arith.cmpf oeq, %10, %14 : vector<64x64xf32>
    %c64_i32 = arith.constant 64 : i32
    %16 = vector.broadcast %c64_i32 : i32 to vector<64x64xi32>
    %17 = arith.select %15, %13, %16 : vector<64x64xi1>, vector<64x64xi32>
    %cst_8 = arith.constant dense<2147483647> : vector<64xi32>
    %18 = vector.multi_reduction <minsi>, %17, %cst_8 [0] : vector<64x64xi32> to vector<64xi32>
    %19 = vector.shape_cast %18 : vector<64xi32> to vector<1x64xi32>
    %20 = vector.broadcast %19 : vector<1x64xi32> to vector<64x64xi32>
    %21 = arith.cmpi eq, %13, %20 : vector<64x64xi32>
    %22 = arith.extui %21 : vector<64x64xi1> to vector<64x64xi32>
    %23 = arith.sitofp %22 : vector<64x64xi32> to vector<64x64xf32>
    %cst_9 = arith.constant dense<0.000000e+00> : vector<32x64xf32>
    %24 = tpu.matmul %2, %23, %cst_9 {dimension_numbers = #tpu.dot_dimension_numbers<[0], [0], [1], [1], [0, 1, 1, 1], [], []>, precision = #tpu.contract_precision<fp32>} : vector<64x32xf32>, vector<64x64xf32>, vector<32x64xf32> -> vector<32x64xf32>
    %c0_10 = arith.constant 0 : index
    %c0_11 = arith.constant 0 : index
    %c0_12 = arith.constant 0 : index
    %25 = vector.load %arg5[%c0_10, %c0_11, %c0_12] : memref<1x32x64xf32, #tpu.memory_space<vmem>>, vector<1x32x64xf32>
    %26 = vector.shape_cast %25 : vector<1x32x64xf32> to vector<32x64xf32>
    %27 = vector.shape_cast %24 : vector<32x64xf32> to vector<1x32x64xf32>
    tpu.vector_store %arg5[%c0_10, %c0_11, %c0_12], %27 {strides = array<i32>} : memref<1x32x64xf32, #tpu.memory_space<vmem>>, vector<1x32x64xf32>,
    %28 = vector.shape_cast %19 : vector<1x64xi32> to vector<1x1x1x64xi32>
    %c0_13 = arith.constant 0 : index
    %c0_14 = arith.constant 0 : index
    %c0_15 = arith.constant 0 : index
    %c0_16 = arith.constant 0 : index
    %29 = vector.load %arg6[%c0_13, %c0_14, %c0_15, %c0_16] : memref<1x1x1x64xi32, #tpu.memory_space<vmem>>, vector<1x1x1x64xi32>
    tpu.vector_store %arg6[%c0_13, %c0_14, %c0_15, %c0_16], %28 {strides = array<i32>} : memref<1x1x1x64xi32, #tpu.memory_space<vmem>>, vector<1x1x1x64xi32>,
    %30 = arith.subf %24, %1 : vector<32x64xf32>
    %31 = arith.mulf %30, %30 : vector<32x64xf32>
    %cst_17 = arith.constant dense<0.000000e+00> : vector<64xf32>
    %32 = vector.multi_reduction <add>, %31, %cst_17 [0] : vector<32x64xf32> to vector<64xf32>
    %33 = vector.shape_cast %32 : vector<64xf32> to vector<1x64xf32>
    %34 = vector.shape_cast %33 : vector<1x64xf32> to vector<1x1x1x64xf32>
    %c0_18 = arith.constant 0 : index
    %c0_19 = arith.constant 0 : index
    %c0_20 = arith.constant 0 : index
    %c0_21 = arith.constant 0 : index
    %35 = vector.load %arg7[%c0_18, %c0_19, %c0_20, %c0_21] : memref<1x1x1x64xf32, #tpu.memory_space<vmem>>, vector<1x1x1x64xf32>
    tpu.vector_store %arg7[%c0_18, %c0_19, %c0_20, %c0_21], %34 {strides = array<i32>} : memref<1x1x1x64xf32, #tpu.memory_space<vmem>>, vector<1x1x1x64xf32>,
    return
  }
  func.func @transform_0(%arg0: i32, %arg1: i32) -> (i32, i32, i32) {
    %c0_i32 = arith.constant 0 : i32
    %c0_i32_0 = arith.constant 0 : i32
    return %arg0, %c0_i32, %arg1 : i32, i32, i32
  }
  func.func @transform_1(%arg0: i32, %arg1: i32) -> (i32, i32) {
    %c0_i32 = arith.constant 0 : i32
    %c0_i32_0 = arith.constant 0 : i32
    %c0_i32_1 = arith.constant 0 : i32
    return %c0_i32, %c0_i32_0 : i32, i32
  }
  func.func @transform_2(%arg0: i32, %arg1: i32) -> (i32, i32) {
    %c0_i32 = arith.constant 0 : i32
    %c0_i32_0 = arith.constant 0 : i32
    %c0_i32_1 = arith.constant 0 : i32
    return %c0_i32, %c0_i32_0 : i32, i32
  }
  func.func @transform_3(%arg0: i32, %arg1: i32) -> (i32, i32, i32) {
    %c0_i32 = arith.constant 0 : i32
    %c0_i32_0 = arith.constant 0 : i32
    return %arg0, %c0_i32, %arg1 : i32, i32, i32
  }
  func.func @transform_4(%arg0: i32, %arg1: i32) -> (i32, i32, i32, i32) {
    %c0_i32 = arith.constant 0 : i32
    %c0_i32_0 = arith.constant 0 : i32
    %c0_i32_1 = arith.constant 0 : i32
    return %arg0, %arg1, %c0_i32, %c0_i32_0 : i32, i32, i32, i32
  }
  func.func @transform_5(%arg0: i32, %arg1: i32) -> (i32, i32, i32, i32) {
    %c0_i32 = arith.constant 0 : i32
    %c0_i32_0 = arith.constant 0 : i32
    %c0_i32_1 = arith.constant 0 : i32
    return %arg0, %arg1, %c0_i32, %c0_i32_0 : i32, i32, i32, i32
  }
}

</mosaic_0001>

<bundles_post_ra>
// kernel: codebook_forward.1
= control target key start
LH: loop header
LB: loop body
LE: loop exit
PB: predicated region body
PF: predicated region fallthrough
CT: control target
= control target key end

     0   :  { %s1916_s18 = smov 0   ;;  %s1918_s19 = smov 0   ;;  %s2297_s0 = inlined_call_operand.vmem [shape: f32[2,32,64], index: 0, kind: input, shape index: {}]   ;;  %s2298_s1 = inlined_call_operand.vmem [shape: f32[64,32], index: 1, kind: input, shape index: {}]   ;;  %s2299_s2 = inlined_call_operand.vmem [shape: f32[64,1], index: 2, kind: input, shape index: {}]   ;;  %s2300_s3 = inlined_call_operand.vmem [shape: f32[2,32,64], index: 3, kind: output, shape index: {0}]   ;;  %s2301_s4 = inlined_call_operand.vmem [shape: s32[2,1,1,64], index: 4, kind: output, shape index: {1}]   ;;  %s2302_s5 = inlined_call_operand.vmem [shape: f32[2,1,1,64], index: 5, kind: output, shape index: {2}]  }
   0x1   :  { %s1920_s20 = smov 0  }
   0x2 LB: > { %s28_s21 = sadd.s32 1, %s1877_s19  ;;  %p1447_p0 = scmp.ge.s32.totalorder %s1881_s20, 1  ;;  %s1881_s20 = sphi %s1920_s20, %s16_s20   ;;  %s1877_s19 = sphi %s1918_s19, %s2312_s19   ;;  %s1873_s18 = sphi %s1916_s18, %s2311_s18  }
   0x3   : > { %p30_p1 = scmp.ge.s32.totalorder %s28_s21, 2  ;;  %p215_p2 = scmp.lt.s32.totalorder %s1881_s20, 3 }
   0x5   : > { %s2314_s21 = smov (%p30_p1, %s28_s21), 0  ;;  %p216_p3 = pnand %p1447_p0, %p215_p2 }
   0x6   : > { %p261_p4 = scmp.lt.s32.totalorder (!%p216_p3), %s1873_s18, 1  ;;  %v294_v0 = vld [vmem:[%s2298_s1] sm:$0xff] (!%p216_p3)  ;;  %v295_v1 = vld [vmem:[%s2298_s1 + $0x8] sm:$0xff] (!%p216_p3)  ;;  %vm308_vm0 = vcmask (!%p216_p3), 261120   ;;  %v1883_v3 = vmov (!%p216_p3), 0   ;;  %v388_v4 = vld [vmem:[%s2299_s2 + $0x10] sm:$0xff] (!%p216_p3) }
   0x7   : > { %219 = sbr.rel (%p216_p3) target bundleno = 592 (0x250), region = 32  ;;  %v302_v2 = vpack.c.bf16 (!%p216_p3), %v295_v1, %v294_v0  ;;  %1858 = vset.pattern.permute.xlu1 (!%p216_p3), %v1883_v3  ;;  %1857 = vset.pattern.permute.xlu0 (!%p216_p3), %v1883_v3  ;;  %v386_v5 = vld [vmem:[%s2299_s2] sm:$0xff] (!%p216_p3)  ;;  %v389_v6 = vld [vmem:[%s2299_s2 + $0x18] sm:$0xff] (!%p216_p3)  ;;  %v387_v7 = vld [vmem:[%s2299_s2 + $0x8] sm:$0xff] (!%p216_p3)  ;;  %vm450_vm1 = vcmask (!%p216_p3), 523264  }
   0x8   : > { %414 = vperm.xlu1 (!%p216_p3), %1858, %v388_v4   ;;  %404 = vperm.xlu0 (!%p216_p3), %1857, %v386_v5   ;;  %v391_v14 = vld [vmem:[%s2299_s2 + $0x28] sm:$0xff] (!%p216_p3)  ;;  %v390_v15 = vld [vmem:[%s2299_s2 + $0x20] sm:$0xff] (!%p216_p3)  ;;  %v296_v16 = vld [vmem:[%s2298_s1 + $0x10] sm:$0xff] (!%p216_p3) }
   0x9   : > { %1574 = vmatprep.mubr.msk.bf16.mxu0 (!%p216_p3), %vm308_vm0, %v302_v2  ;;  %v297_v17 = vld [vmem:[%s2298_s1 + $0x18] sm:$0xff] (!%p216_p3)  ;;  %v298_v18 = vld [vmem:[%s2298_s1 + $0x20] sm:$0xff] (!%p216_p3)  ;;  %v299_v19 = vld [vmem:[%s2298_s1 + $0x28] sm:$0xff] (!%p216_p3) }
   0xa   : > { %v393_v20 = vld [vmem:[%s2299_s2 + $0x38] sm:$0xff] (!%p216_p3)  ;;  %v303_v21 = vpack.c.bf16 (!%p216_p3), %v297_v17, %v296_v16  ;;  %v392_v22 = vld [vmem:[%s2299_s2 + $0x30] sm:$0xff] (!%p216_p3)  ;;  %v304_v23 = vpack.c.bf16 (!%p216_p3), %v299_v19, %v298_v18 }
   0xb   : > { %v300_v24 = vld [vmem:[%s2298_s1 + $0x30] sm:$0xff] (!%p216_p3)  ;;  %v301_v25 = vld [vmem:[%s2298_s1 + $0x38] sm:$0xff] (!%p216_p3) }
   0xc   : > { %419 = vperm.xlu1 (!%p216_p3), %1858, %v389_v6   ;;  %409 = vperm.xlu0 (!%p216_p3), %1857, %v387_v7   ;;  %v305_v26 = vpack.c.bf16 (!%p216_p3), %v301_v25, %v300_v24 }
   0xe   : > { %s2316_s18 = smov (!%p261_p4, %s1873_s18), 1 }
   0xf   : > { %s1490_s30 = sshll.u32 %s2316_s18, 5  ;;  %s282_s15 = scalar_lea.vmem %s2301_s4, %s2316_s18 }
  0x10   : > { %s268_s10 = scalar_lea.vmem %s2297_s0, %s1490_s30  ;;  %429 = vperm.xlu1 %1858, %v391_v14   ;;  %424 = vperm.xlu0 %1857, %v390_v15   ;;  %s276_s22 = scalar_lea.vmem %s2300_s3, %s1490_s30 }
  0x11   : > { %v1961_v8 = vld [vmem:[%s268_s10] sm:$0xff]  ;;  %v1963_v9 = vld [vmem:[%s268_s10 + $0x8] sm:$0xff]  ;;  %v1965_v10 = vld [vmem:[%s268_s10 + $0x10] sm:$0xff]  ;;  %s288_s24 = scalar_lea.vmem %s2302_s5, %s2316_s18 }
  0x12   : > { %v306_v11 = vpack.c.bf16 %v1963_v9, %v1961_v8  ;;  %v1969_v12 = vld [vmem:[%s268_s10 + $0x18] sm:$0xff] }
  0x13   : > { %v307_v13 = vpack.c.bf16 %v1969_v12, %v1965_v10 }
  0x14   : > { %1570 = vmatprep.subr.bf16.mxu0 %v306_v11  ;;  %439 = vperm.xlu1 %1858, %v393_v20  }
  0x15   : > { %1571 = vmatpush3.bf16.msra.mxu0 %v306_v11  ;;  %434 = vperm.xlu0 %1857, %v392_v22  }
  0x16   : > { %1572 = vmatprep.subr.bf16.mxu0 %v307_v13 }
  0x19   : > { %1573 = vmatpush3.bf16.msra.mxu0 %v307_v13 }
  0x1c   : > { %1575 = vmatmul.mubr.msk.bf16.vlgmr.msra.gmra.mrb[0].mxu0 %vm308_vm0, %v303_v21 }
  0x1d   : > { %1578 = vmatprep.mubr.msk.bf16.mxu0 %vm308_vm0, %v304_v23  ;;  %v472_v23 = vlaneseq }
  0x24   : > { %1579 = vmatmul.mubr.msk.bf16.gmra.mrb[4].mxu0 %vm308_vm0, %v305_v26  ;;  %v2022_v26 = vshrl.u32 %v472_v23, 7  ;;  %v1885_v23 = vmov 1.0|1.0  }
  0x33   : > { %552 = vxpose.xlu0.b32.start [1/8] (short) (narrow) %v294_v0, 32 }
  0x37   : > { %553 = vxpose.xlu0.b32.cont [2/8] (short) (narrow) %v295_v1, 32 }
  0x3b   : > { %554 = vxpose.xlu0.b32.cont [3/8] (short) (narrow) %v296_v16, 32 }
  0x3f   : > { %555 = vxpose.xlu0.b32.cont [4/8] (short) (narrow) %v297_v17, 32 }
  0x43   : > { %556 = vxpose.xlu0.b32.cont [5/8] (short) (narrow) %v298_v18, 32 }
  0x47   : > { %557 = vxpose.xlu0.b32.cont [6/8] (short) (narrow) %v299_v19, 32 }
  0x4b   : > { %558 = vxpose.xlu0.b32.cont [7/8] (short) (narrow) %v300_v24, 32 }
  0x4f   : > { %559 = vxpose.xlu0.b32.end [8/8] (short) (narrow) %v301_v25, 32 }
  0x87   : > { %v405_v27 = vpop.permute.xlu0 %404  ;;  %v415_v38 = vpop.permute.xlu1 %414 }
  0x8b   : > { %v410_v28 = vpop.permute.xlu0 %409  ;;  %v420_v39 = vpop.permute.xlu1 %419 }
  0x8f   : > { %v425_v29 = vpop.permute.xlu0 %424  ;;  %v430_v45 = vpop.permute.xlu1 %429 }
  0x93   : > { %v440_v60 = vpop.permute.xlu1 %439 }
  0x94   : > { %v435_v30 = vpop.permute.xlu0 %434 }
  0xb3   : > { %v568_v31 = vpop.trf.xlu0 }
  0xb4   : > { %v585_v32 = vsel %vm450_vm1, %v568_v31, 0  ;;  %v2031_v31 = vadd.s32 24, %v2022_v26 }
  0xb5   : > { %v2007_v33 = vand.u32 4294901760, %v585_v32 }
  0xb7   : > { %v2010_v34 = vsub.f32 %v585_v32, %v2007_v33  ;;  %v2034_v32 = vadd.s32 32, %v2022_v26 }
  0xb9   : > { %v671_v35 = vand.u32 4294901760, %v2010_v34 }
  0xbb   : > { %v672_v36 = vsub.f32 %v2010_v34, %v671_v35  ;;  %1664 = vmatprep.mubr.f32.mxu1 %v671_v35  ;;  %v2037_v35 = vadd.s32 40, %v2022_v26 }
  0xbd   : > { %v673_v37 = vand.u32 4294901760, %v672_v36  ;;  %v2040_v36 = vadd.s32 48, %v2022_v26 }
  0xbf   : > { %1598 = vmatprep.mubr.f32.mxu0 %v673_v37  ;;  %v2043_v37 = vadd.s32 56, %v2022_v26 }
  0xef   : > { %v1576_v40 = vpop.f32.mrb[0].mxu0 }
  0xf0   : > { %v355_v41 = vpop.f32.mrb[1].mxu0  ;;  %v396_v44 = vmul.f32 2.0, %v1576_v40 }
  0xf1   : > { %v1577_v42 = vpop.f32.mrb[2].mxu0  ;;  %v394_v46 = vmul.f32 2.0, %v355_v41 }
  0xf2   : > { %v358_v43 = vpop.f32.mrb[3].mxu0  ;;  %v397_v47 = vmul.f32 2.0, %v1577_v42  ;;  %v444_v50 = vsub.f32 %v415_v38, %v396_v44 }
  0xf3   : > { %v395_v48 = vmul.f32 2.0, %v358_v43  ;;  %v442_v53 = vsub.f32 %v405_v27, %v394_v46 }
  0xf4   : > { %v445_v56 = vsub.f32 %v420_v39, %v397_v47  ;;  %v453_v0 = vsel %vm450_vm1, %v444_v50, inf }
  0xf5   : > { %v443_v61 = vsub.f32 %v410_v28, %v395_v48  ;;  %v451_v3 = vsel %vm450_vm1, %v442_v53, inf }
  0xf6   : > { %v454_v7 = vsel %vm450_vm1, %v445_v56, inf }
  0xf7   : > { %v1580_v49 = vpop.f32.mrb[4].mxu0  ;;  %v452_v14 = vsel %vm450_vm1, %v443_v61, inf }
  0xf8   : > { %v400_v51 = vmul.f32 2.0, %v1580_v49  ;;  %v371_v52 = vpop.f32.mrb[5].mxu0 }
  0xf9   : > { %v398_v54 = vmul.f32 2.0, %v371_v52  ;;  %v1581_v55 = vpop.f32.mrb[6].mxu0 }
  0xfa   : > { %v448_v57 = vsub.f32 %v435_v30, %v400_v51  ;;  %v401_v58 = vmul.f32 2.0, %v1581_v55  ;;  %v374_v59 = vpop.f32.mrb[7].mxu0  ;;  %v2028_v30 = vadd.s32 16, %v2022_v26 }
  0xfb   : > { %v446_v62 = vsub.f32 %v425_v29, %v398_v54  ;;  %v399_v63 = vmul.f32 2.0, %v374_v59  ;;  %v2025_v29 = vadd.s32 8, %v2022_v26  ;;  %v569_v54 = vpop.trf.xlu0 }
  0xfc   : > { %v459_v1 = vsel %vm450_vm1, %v448_v57, inf  ;;  %v449_v2 = vsub.f32 %v440_v60, %v401_v58 }
  0xfd   : > { %v460_v4 = vmin.f32 %v453_v0, %v459_v1  ;;  %v455_v5 = vsel %vm450_vm1, %v446_v62, inf  ;;  %v447_v6 = vsub.f32 %v430_v45, %v399_v63 }
  0xfe   : > { %v456_v11 = vmin.f32 %v451_v3, %v455_v5  ;;  %v461_v13 = vsel %vm450_vm1, %v449_v2, inf }
  0xff   : > { %v462_v15 = vmin.f32 %v454_v7, %v461_v13  ;;  %v457_v16 = vsel %vm450_vm1, %v447_v6, inf }
 0x100   : > { %v458_v17 = vmin.f32 %v452_v14, %v457_v16 }
 0x101   : > { %v464_v18 = vmin.f32 %v460_v4, %v462_v15 }
 0x102   : > { %v463_v19 = vmin.f32 %v456_v11, %v458_v17  ;;  %v1884_v17 = vmov 0.0  }
 0x104   : > { %v465_v20 = vmin.f32 %v463_v19, %v464_v18 }
 0x106   : > { %v466_v21 = vrot.slane %v465_v20, 4 }
 0x108   : > { %v467_v22 = vmin.f32 %v465_v20, %v466_v21 }
 0x10a   : > { %v468_v24 = vrot.slane %v467_v22, 2 }
 0x10c   : > { %v469_v25 = vmin.f32 %v467_v22, %v468_v24 }
 0x10e   : > { %v470_v27 = vrot.slane %v469_v25, 1 }
 0x110   : > { %v471_v28 = vmin.f32 %v469_v25, %v470_v27 }
 0x112   : > { %vm481_vm2 = vcmp.eq.f32.partialorder %v442_v53, %v471_v28  ;;  %vm482_vm3 = vcmp.eq.f32.partialorder %v443_v61, %v471_v28  ;;  %vm483_vm4 = vcmp.eq.f32.partialorder %v444_v50, %v471_v28  ;;  %vm484_vm5 = vcmp.eq.f32.partialorder %v445_v56, %v471_v28 }
 0x113   : > { %vm485_vm6 = vcmp.eq.f32.partialorder %v446_v62, %v471_v28  ;;  %vm486_vm7 = vcmp.eq.f32.partialorder %v447_v6, %v471_v28  ;;  %vm487_vm8 = vcmp.eq.f32.partialorder %v448_v57, %v471_v28  ;;  %vm488_vm9 = vcmp.eq.f32.partialorder %v449_v2, %v471_v28  ;;  %v570_v62 = vpop.trf.xlu0 }
 0x114   : > { %v489_v38 = vsel %vm481_vm2, %v2022_v26, 64  ;;  %v490_v39 = vsel %vm482_vm3, %v2025_v29, 64  ;;  %v491_v40 = vsel %vm483_vm4, %v2028_v30, 64  ;;  %v492_v41 = vsel %vm484_vm5, %v2031_v31, 64 }
 0x115   : > { %v493_v42 = vsel %vm485_vm6, %v2034_v32, 64  ;;  %v494_v43 = vsel %vm486_vm7, %v2037_v35, 64  ;;  %v495_v44 = vsel %vm487_vm8, %v2040_v36, 64  ;;  %v496_v45 = vsel %vm488_vm9, %v2043_v37, 64 }
 0x116   : > { %v497_v46 = vsel %vm450_vm1, %v489_v38, 2147483647  ;;  %v498_v47 = vsel %vm450_vm1, %v490_v39, 2147483647  ;;  %v499_v48 = vsel %vm450_vm1, %v491_v40, 2147483647 }
 0x117   : > { %v500_v49 = vsel %vm450_vm1, %v492_v41, 2147483647  ;;  %v501_v50 = vsel %vm450_vm1, %v493_v42, 2147483647  ;;  %v504_v51 = vsel %vm450_vm1, %v494_v43, 2147483647  ;;  %v571_v3 = vpop.trf.xlu0 }
 0x118   : > { %vm502_vm10 = vcmp.lt.s32.totalorder %v497_v46, %v501_v50  ;;  %vm505_vm11 = vcmp.lt.s32.totalorder %v498_v47, %v504_v51  ;;  %v507_v52 = vsel %vm450_vm1, %v495_v44, 2147483647  ;;  %v510_v53 = vsel %vm450_vm1, %v496_v45, 2147483647 }
 0x119   : > { %v503_v55 = vsel %vm502_vm10, %v497_v46, %v501_v50  ;;  %v506_v56 = vsel %vm505_vm11, %v498_v47, %v504_v51  ;;  %vm508_vm12 = vcmp.lt.s32.totalorder %v499_v48, %v507_v52  ;;  %vm511_vm13 = vcmp.lt.s32.totalorder %v500_v49, %v510_v53 }
 0x11a   : > { %v509_v57 = vsel %vm508_vm12, %v499_v48, %v507_v52  ;;  %v512_v58 = vsel %vm511_vm13, %v500_v49, %v510_v53  ;;  %vm513_vm14 = vcmp.lt.s32.totalorder %v503_v55, %v506_v56  ;;  %v588_v2 = vsel %vm450_vm1, %v569_v54, 0 }
 0x11b   : > { %v514_v59 = vsel %vm513_vm14, %v503_v55, %v506_v56  ;;  %vm515_vm15 = vcmp.lt.s32.totalorder %v509_v57, %v512_v58  ;;  %v2062_v5 = vand.u32 4294901760, %v588_v2  ;;  %v591_v7 = vsel %vm450_vm1, %v570_v62, 0 }
 0x11c   : > { %v516_v60 = vsel %vm515_vm15, %v509_v57, %v512_v58  ;;  %v594_v11 = vsel %vm450_vm1, %v571_v3, 0  ;;  %vm1266_vm4 = vcmask 516096   ;;  %v2073_v15 = vand.u32 4294901760, %v591_v7 }
 0x11d   : > { %vm517_vm0 = vcmp.lt.s32.totalorder %v514_v59, %v516_v60  ;;  %v2071_v14 = vsub.f32 %v588_v2, %v2062_v5  ;;  %v2075_v16 = vand.u32 4294901760, %v594_v11 }
 0x11e   : > { %v518_v61 = vsel %vm517_vm0, %v514_v59, %v516_v60 }
 0x11f   : > { %v519_v63 = vrot.slane %v518_v61, 4  ;;  %v2136_v38 = vsub.f32 %v594_v11, %v2075_v16  ;;  %v681_v48 = vand.u32 4294901760, %v2071_v14 }
 0x121   : > { %vm520_vm2 = vcmp.lt.s32.totalorder %v518_v61, %v519_v63  ;;  %v701_v50 = vand.u32 4294901760, %v2136_v38  ;;  %v682_v60 = vsub.f32 %v2071_v14, %v681_v48 }
 0x122   : > { %v521_v0 = vsel %vm520_vm2, %v518_v61, %v519_v63 }
 0x123   : > { %v522_v1 = vrot.slane %v521_v0, 2  ;;  %v702_v61 = vsub.f32 %v2136_v38, %v701_v50 }
 0x125   : > { %vm523_vm3 = vcmp.lt.s32.totalorder %v521_v0, %v522_v1 }
 0x126   : > { %v524_v4 = vsel %vm523_vm3, %v521_v0, %v522_v1 }
 0x127   : > { %v525_v6 = vrot.slane %v524_v4, 1 }
 0x129   : > { %vm526_vm5 = vcmp.lt.s32.totalorder %v524_v4, %v525_v6 }
 0x12a   : > { %v527_v13 = vsel %vm526_vm5, %v524_v4, %v525_v6  ;;  %v683_v6 = vand.u32 4294901760, %v682_v60 }
 0x12b   : > { %vm528_vm6 = vcmp.eq.s32.totalorder %v2022_v26, %v527_v13  ;;  %vm529_vm7 = vcmp.eq.s32.totalorder %v2025_v29, %v527_v13  ;;  %vm530_vm8 = vcmp.eq.s32.totalorder %v2028_v30, %v527_v13  ;;  %vm531_vm9 = vcmp.eq.s32.totalorder %v2031_v31, %v527_v13  ;;  %1267 = vst.msk [vmem:[%s282_s15] sm:$0x1] %vm1266_vm4, %v527_v13 }
 0x12c   : > { %v1456_v18 = vsel %vm528_vm6, 1.0, %v1884_v17  ;;  %v1457_v19 = vsel %vm529_vm7, 1.0, %v1884_v17  ;;  %vm2082_vm10 = vmpackc.low %vm529_vm7, %vm528_vm6  ;;  %v1458_v21 = vsel %vm530_vm8, 1.0, %v1884_v17  ;;  %v1459_v22 = vsel %vm531_vm9, 1.0, %v1884_v17 }
 0x12d   : > { %1715 = vmatprep.subr.msk.bf16.mxu0 %vm2082_vm10, %v1885_v23  ;;  %v2093_v24 = vsub.f32 %v1456_v18, %v1456_v18  ;;  %v2095_v25 = vsub.f32 %v1457_v19, %v1457_v19  ;;  %1763 = vmatprep.subr.msk.bf16.mxu1 %vm2082_vm10, %v1885_v23  ;;  %v2100_v26 = vsub.f32 %v1458_v21, %v1458_v21  ;;  %vm2112_vm11 = vmpackc.low %vm531_vm9, %vm530_vm8 }
 0x12e   : > { %1717 = vmatpush3.bf16.msk.msra.mxu0 %vm2082_vm10, %v1885_v23  ;;  %1765 = vmatpush3.bf16.msk.msra.mxu1 %vm2082_vm10, %v1885_v23  ;;  %v2116_v28 = vsub.f32 %v1459_v22, %v1459_v22  ;;  %vm532_vm12 = vcmp.eq.s32.totalorder %v2034_v32, %v527_v13  ;;  %vm533_vm13 = vcmp.eq.s32.totalorder %v2037_v35, %v527_v13 }
 0x12f   : > { %1719 = vmatprep.subr.msk.bf16.mxu0 %vm2112_vm11, %v1885_v23  ;;  %1767 = vmatprep.subr.msk.bf16.mxu1 %vm2112_vm11, %v1885_v23  ;;  %v1460_v29 = vsel %vm532_vm12, 1.0, %v1884_v17  ;;  %v1461_v30 = vsel %vm533_vm13, 1.0, %v1884_v17  ;;  %vm534_vm14 = vcmp.eq.s32.totalorder %v2040_v36, %v527_v13  ;;  %vm535_vm15 = vcmp.eq.s32.totalorder %v2043_v37, %v527_v13  ;;  %vm2154_vm0 = vmpackc.low %vm533_vm13, %vm532_vm12 }
 0x130   : > { %v2133_v31 = vsub.f32 %v591_v7, %v2073_v15  ;;  %v1462_v39 = vsel %vm534_vm14, 1.0, %v1884_v17  ;;  %v1463_v40 = vsel %vm535_vm15, 1.0, %v1884_v17  ;;  %v712_v41 = vand.u32 4294901760, %v2093_v24  ;;  %vm2191_vm2 = vmpackc.low %vm535_vm15, %vm534_vm14 }
 0x131   : > { %v719_v42 = vand.u32 4294901760, %v2095_v25  ;;  %v2158_v44 = vsub.f32 %v1460_v29, %v1460_v29  ;;  %v2160_v45 = vsub.f32 %v1461_v30, %v1461_v30  ;;  %v726_v46 = vand.u32 4294901760, %v2100_v26 }
 0x132   : > { %1721 = vmatpush3.bf16.msk.msra.mxu0 %vm2112_vm11, %v1885_v23  ;;  %1769 = vmatpush3.bf16.msk.msra.mxu1 %vm2112_vm11, %v1885_v23  ;;  %v733_v47 = vand.u32 4294901760, %v2116_v28  ;;  %v713_v32 = vsub.f32 %v2093_v24, %v712_v41  ;;  %v691_v49 = vand.u32 4294901760, %v2133_v31  ;;  %v2175_v51 = vsub.f32 %v1462_v39, %v1462_v39 }
 0x133   : > { %1723 = vmatprep.subr.msk.bf16.mxu0 %vm2154_vm0, %v1885_v23  ;;  %1771 = vmatprep.subr.msk.bf16.mxu1 %vm2154_vm0, %v1885_v23  ;;  %v720_v35 = vsub.f32 %v2095_v25, %v719_v42  ;;  %v2177_v52 = vsub.f32 %v1463_v40, %v1463_v40  ;;  %v727_v55 = vsub.f32 %v2100_v26, %v726_v46  ;;  %v740_v58 = vand.u32 4294901760, %v2158_v44 }
 0x134   : > { %v714_v53 = vand.u32 4294901760, %v713_v32  ;;  %v734_v56 = vsub.f32 %v2116_v28, %v733_v47  ;;  %v747_v59 = vand.u32 4294901760, %v2160_v45  ;;  %v1778_v36 = vpack.c.bf16 %v719_v42, %v712_v41 }
 0x135   : > { %v721_v54 = vand.u32 4294901760, %v720_v35  ;;  %v692_v37 = vsub.f32 %v2133_v31, %v691_v49  ;;  %v754_v62 = vand.u32 4294901760, %v2175_v51  ;;  %v728_v0 = vand.u32 4294901760, %v727_v55 }
 0x136   : > { %1725 = vmatpush3.bf16.msk.msra.mxu0 %vm2154_vm0, %v1885_v23  ;;  %1773 = vmatpush3.bf16.msk.msra.mxu1 %vm2154_vm0, %v1885_v23  ;;  %v735_v1 = vand.u32 4294901760, %v734_v56  ;;  %v761_v2 = vand.u32 4294901760, %v2177_v52  ;;  %v741_v3 = vsub.f32 %v2158_v44, %v740_v58  ;;  %v748_v4 = vsub.f32 %v2160_v45, %v747_v59 }
 0x137   : > { %1727 = vmatprep.subr.msk.bf16.mxu0 %vm2191_vm2, %v1885_v23  ;;  %1775 = vmatprep.subr.msk.bf16.mxu1 %vm2191_vm2, %v1885_v23  ;;  %v1730_v63 = vpack.c.bf16 %v721_v54, %v714_v53  ;;  %v1782_v7 = vpack.c.bf16 %v733_v47, %v726_v46  ;;  %v693_v11 = vand.u32 4294901760, %v692_v37  ;;  %v703_v17 = vand.u32 4294901760, %v702_v61 }
 0x138   : > { %v1734_v13 = vpack.c.bf16 %v735_v1, %v728_v0  ;;  %v755_v18 = vsub.f32 %v2175_v51, %v754_v62  ;;  %v762_v19 = vsub.f32 %v2177_v52, %v761_v2  ;;  %v742_v21 = vand.u32 4294901760, %v741_v3 }
 0x139   : > { %v749_v22 = vand.u32 4294901760, %v748_v4  ;;  %v1786_v40 = vpack.c.bf16 %v747_v59, %v740_v58  ;;  %v1790_v42 = vpack.c.bf16 %v761_v2, %v754_v62  ;;  %v1746_v46 = vpack.c.bf16 %v2095_v25, %v2093_v24 }
 0x13a   : > { %1729 = vmatpush3.bf16.msk.msra.mxu0 %vm2191_vm2, %v1885_v23  ;;  %1777 = vmatpush3.bf16.msk.msra.mxu1 %vm2191_vm2, %v1885_v23  ;;  %v756_v29 = vand.u32 4294901760, %v755_v18  ;;  %v763_v30 = vand.u32 4294901760, %v762_v19  ;;  %v1750_v47 = vpack.c.bf16 %v2116_v28, %v2100_v26  ;;  %v1754_v24 = vpack.c.bf16 %v2160_v45, %v2158_v44 }
 0x13b   : > { %1731 = vmatprep.subr.bf16.mxu0 %v1730_v63  ;;  %1779 = vmatprep.subr.bf16.mxu1 %v1778_v36  ;;  %v1738_v39 = vpack.c.bf16 %v749_v22, %v742_v21  ;;  %v1758_v20 = vpack.c.bf16 %v2177_v52, %v2175_v51 }
 0x13c   : > { %v1742_v41 = vpack.c.bf16 %v763_v30, %v756_v29 }
 0x13d   : > { %1599 = vmatmul.mubr.f32.vlgmr.msra.gmra.mrb[8].mxu0 %v683_v6  ;;  %1665 = vmatmul.mubr.f32.vlgmr.msra.gmra.mrb[0].mxu1 %v681_v48 }
 0x13e   : > { %1733 = vmatpush3.bf16.msra.mxu0 %v1730_v63  ;;  %1781 = vmatpush3.bf16.msra.mxu1 %v1778_v36 }
 0x13f   : > { %1735 = vmatprep.subr.bf16.mxu0 %v1734_v13  ;;  %1783 = vmatprep.subr.bf16.mxu1 %v1782_v7 }
 0x140   : > { %1601 = vmatprep.mubr.f32.mxu0 %v693_v11  ;;  %1667 = vmatprep.mubr.f32.mxu1 %v691_v49 }
 0x141   : > { %1602 = vmatmul.mubr.f32.gmra.mrb[10].mxu0 %v703_v17  ;;  %1668 = vmatmul.mubr.f32.gmra.mrb[2].mxu1 %v701_v50 }
 0x142   : > { %1737 = vmatpush3.bf16.msra.mxu0 %v1734_v13  ;;  %1620 = vmatprep.mubr.f32.mxu0 %v2007_v33 }
 0x143   : > { %1785 = vmatpush3.bf16.msra.mxu1 %v1782_v7  ;;  %1686 = vmatprep.mubr.f32.mxu1 %v2007_v33 }
 0x144   : > { %1739 = vmatprep.subr.bf16.mxu0 %v1738_v39  ;;  %1787 = vmatprep.subr.bf16.mxu1 %v1786_v40 }
 0x146   : > { %1741 = vmatpush3.bf16.msra.mxu0 %v1738_v39 }
 0x147   : > { %1789 = vmatpush3.bf16.msra.mxu1 %v1786_v40  ;;  %1743 = vmatprep.subr.bf16.mxu0 %v1742_v41 }
 0x148   : > { %1791 = vmatprep.subr.bf16.mxu1 %v1790_v42 }
 0x14a   : > { %1745 = vmatpush3.bf16.msra.mxu0 %v1742_v41 }
 0x14b   : > { %1793 = vmatpush3.bf16.msra.mxu1 %v1790_v42  ;;  %1747 = vmatprep.subr.bf16.mxu0 %v1746_v46 }
 0x14c   : > { %1795 = vmatprep.subr.msk.bf16.mxu1 %vm2082_vm10, %v1885_v23 }
 0x14d   : > { %1621 = vmatmul.mubr.f32.vlgmr.msra.gmra.mrb[8].mxu0 %v2062_v5 }
 0x14e   : > { %1687 = vmatmul.mubr.f32.vlgmr.msra.gmra.mrb[0].mxu1 %v2062_v5  ;;  %1623 = vmatprep.mubr.f32.mxu0 %v2073_v15 }
 0x14f   : > { %1749 = vmatpush3.bf16.msra.mxu0 %v1746_v46  ;;  %1689 = vmatprep.mubr.f32.mxu1 %v2073_v15 }
 0x150   : > { %1797 = vmatpush3.bf16.msk.msra.mxu1 %vm2082_vm10, %v1885_v23  ;;  %1751 = vmatprep.subr.bf16.mxu0 %v1750_v47 }
 0x151   : > { %1799 = vmatprep.subr.msk.bf16.mxu1 %vm2112_vm11, %v1885_v23  ;;  %1624 = vmatmul.mubr.f32.gmra.mrb[10].mxu0 %v2075_v16 }
 0x152   : > { %1690 = vmatmul.mubr.f32.gmra.mrb[2].mxu1 %v2075_v16  ;;  %1642 = vmatprep.mubr.f32.mxu0 %v2010_v34 }
 0x153   : > { %1753 = vmatpush3.bf16.msra.mxu0 %v1750_v47  ;;  %1708 = vmatprep.mubr.f32.mxu1 %v2007_v33 }
 0x154   : > { %1801 = vmatpush3.bf16.msk.msra.mxu1 %vm2112_vm11, %v1885_v23  ;;  %1755 = vmatprep.subr.bf16.mxu0 %v1754_v24 }
 0x155   : > { %1803 = vmatprep.subr.msk.bf16.mxu1 %vm2154_vm0, %v1885_v23 }
 0x157   : > { %1757 = vmatpush3.bf16.msra.mxu0 %v1754_v24 }
 0x158   : > { %1805 = vmatpush3.bf16.msk.msra.mxu1 %vm2154_vm0, %v1885_v23  ;;  %1759 = vmatprep.subr.bf16.mxu0 %v1758_v20 }
 0x159   : > { %1807 = vmatprep.subr.msk.bf16.mxu1 %vm2191_vm2, %v1885_v23 }
 0x15b   : > { %1761 = vmatpush3.bf16.msra.mxu0 %v1758_v20 }
 0x15c   : > { %1809 = vmatpush3.bf16.msk.msra.mxu1 %vm2191_vm2, %v1885_v23 }
 0x15e   : > { %1643 = vmatmul.mubr.f32.vlgmr.msra.gmra.mrb[8].mxu0 %v2071_v14 }
 0x15f   : > { %1709 = vmatmul.mubr.f32.vlgmr.msra.gmra.mrb[0].mxu1 %v2062_v5  ;;  %1645 = vmatprep.mubr.f32.mxu0 %v2133_v31 }
 0x160   : > { %1711 = vmatprep.mubr.f32.mxu1 %v2073_v15 }
 0x162   : > { %1646 = vmatmul.mubr.f32.gmra.mrb[10].mxu0 %v2136_v38 }
 0x163   : > { %1712 = vmatmul.mubr.f32.gmra.mrb[2].mxu1 %v2075_v16 }
 0x231   : > { %v1644_v33 = vpop.f32.mrb[8].mxu0 }
 0x232   : > { %v1710_v34 = vpop.f32.mrb[0].mxu1  ;;  %v922_v23 = vpop.f32.mrb[9].mxu0 }
 0x233   : > { %v1810_v25 = vadd.f32 %v1710_v34, %v1644_v33  ;;  %v1240_v14 = vpop.f32.mrb[1].mxu1 }
 0x234   : > { %v1811_v26 = vadd.f32 %v1240_v14, %v922_v23 }
 0x235   : > { %1263 = vst.msk [vmem:[%s276_s22 + $0x8] sm:$0xff] %vm450_vm1, %v1810_v25  ;;  %v1269_v5 = vsub.f32 %v1810_v25, %v1963_v9  ;;  %v1647_v15 = vpop.f32.mrb[10].mxu0 }
 0x236   : > { %1262 = vst.msk [vmem:[%s276_s22] sm:$0xff] %vm450_vm1, %v1811_v26  ;;  %v1268_v16 = vsub.f32 %v1811_v26, %v1961_v8  ;;  %v1713_v27 = vpop.f32.mrb[2].mxu1  ;;  %v936_v28 = vpop.f32.mrb[11].mxu0 }
 0x237   : > { %v1273_v31 = vmul.f32 %v1269_v5, %v1269_v5  ;;  %v1812_v38 = vadd.f32 %v1713_v27, %v1647_v15  ;;  %v1252_v43 = vpop.f32.mrb[3].mxu1 }
 0x238   : > { %v1272_v44 = vmul.f32 %v1268_v16, %v1268_v16  ;;  %v1813_v45 = vadd.f32 %v1252_v43, %v936_v28 }
 0x239   : > { %v1277_v48 = vsel %vm450_vm1, %v1273_v31, 0.0  ;;  %1265 = vst.msk [vmem:[%s276_s22 + $0x18] sm:$0xff] %vm450_vm1, %v1812_v38  ;;  %v1271_v32 = vsub.f32 %v1812_v38, %v1969_v12 }
 0x23a   : > { %v1276_v9 = vsel %vm450_vm1, %v1272_v44, 0.0  ;;  %1264 = vst.msk [vmem:[%s276_s22 + $0x10] sm:$0xff] %vm450_vm1, %v1813_v45  ;;  %v1270_v8 = vsub.f32 %v1813_v45, %v1965_v10 }
 0x23b   : > { %v1278_v35 = vadd.f32 %v1277_v48, %v1276_v9  ;;  %v1275_v49 = vmul.f32 %v1271_v32, %v1271_v32 }
 0x23c   : > { %v1274_v50 = vmul.f32 %v1270_v8, %v1270_v8 }
 0x23d   : > { %v1281_v53 = vsel %vm450_vm1, %v1275_v49, 0.0 }
 0x23e   : > { %v1279_v51 = vsel %vm450_vm1, %v1274_v50, 0.0 }
 0x23f   : > { %v1280_v52 = vadd.f32 %v1279_v51, %v1278_v35 }
 0x241   : > { %v1282_v54 = vadd.f32 %v1281_v53, %v1280_v52 }
 0x243   : > { %v1283_v55 = vrot.slane %v1282_v54, 4 }
 0x245   : > { %v1284_v56 = vadd.f32 %v1283_v55, %v1282_v54 }
 0x247   : > { %v1285_v57 = vrot.slane %v1284_v56, 2 }
 0x249   : > { %v1286_v12 = vadd.f32 %v1285_v57, %v1284_v56 }
 0x24b   : > { %v1287_v58 = vrot.slane %v1286_v12, 1 }
 0x24d   : > { %v1288_v59 = vadd.f32 %v1287_v58, %v1286_v12 }
 0x24f   : > { %1289 = vst.msk [vmem:[%s288_s24] sm:$0x1] %vm1266_vm4, %v1288_v59 }
 0x250 PF: > { %s16_s20 = sadd.s32 1, %s1881_s20   ;;  %s2311_s18 = smov %s1877_s19 }
 0x251   : > { %p13_p5 = scmp.ge.s32.totalorder %s16_s20, 4   ;;  %s2312_s19 = smov %s2314_s21 }
 0x253   :  { %15 = sbr.rel (!%p13_p5) target bundleno = 2 (0x2), region = 86 }

</bundles_post_ra>
